<compile_context>
chip_gen: v6e
topology: v6e:2x2x1
jax: 0.10.0
libtpu: 0.0.40
codegen_flags: <defaults>
</compile_context>

<pallas_src>
import functools

import jax
import jax.numpy as jnp
from jax import lax
from jax.experimental import pallas as pl
from jax.experimental.pallas import tpu as pltpu


def _round_up(a, b):
    return (a + b - 1) // b * b


def _conv_mm_kernel(w_ref, x_ref, conv_ref, stats_ref):
    """One M tile: conv^T = W^T @ X^T (MXU, f32 acc) + per-tile channel stats."""
    acc = jnp.dot(w_ref[...], x_ref[...], preferred_element_type=jnp.float32)
    conv_ref[...] = acc                                  # (fout_p, tm), lane-dense
    s = jnp.sum(acc, axis=1, keepdims=True)              # (fout_p, 1)
    sq = jnp.sum(acc * acc, axis=1, keepdims=True)       # (fout_p, 1)
    stats_ref[...] = jnp.concatenate([s, sq], axis=1)[None]   # (1, fout_p, 2)


def _bn_act_kernel(conv_ref, scale_ref, shift_ref, out_ref, *, slope):
    """One M tile: per-channel y = conv*scale + shift, then LeakyReLU."""
    y = conv_ref[...] * scale_ref[...] + shift_ref[...]
    out_ref[...] = jnp.where(y >= 0, y, slope * y).astype(out_ref.dtype)


def conv_block_forward(x, w, gamma, beta, *, eps=1e-5, slope=0.2, tm_max=512):
    """x: (B, fin, H, W) NCHW, w: (fout, fin, 4, 4). Returns (B, fout, Ho, Wo)."""
    B, fin, H, Wd = x.shape
    fout = w.shape[0]
    kh = kw = 4
    stride = 2
    Ho = (H + 2 - kh) // stride + 1
    Wo = (Wd + 2 - kw) // stride + 1
    M = B * Ho * Wo
    K = fin * kh * kw

    fout_p = _round_up(fout, 8)                           # sublane-aligned channels
    tm = min(_round_up(tm_max, 128), _round_up(M, 128))   # big, 128-aligned M tile
    M_pad = _round_up(M, tm)                              # ragged tail -> zero lanes
    n_tiles = M_pad // tm

    # ---- glue: im2col in bf16, transposed to (K, M) (pure data movement) ----
    # TODO(synk): assemble the patches in-kernel via manual DMA from the padded
    # input (memory_space=pl.ANY) to avoid materializing the 4x-expanded im2col
    # matrix in HBM.
    x_pad = jnp.pad(x, ((0, 0), (0, 0), (1, 1), (1, 1)))
    patches = []
    for r in range(kh):
        for c in range(kw):
            patches.append(
                x_pad[:, :, r:r + stride * Ho:stride, c:c + stride * Wo:stride])
    p = jnp.stack(patches, axis=0)                 # (16, B, fin, Ho, Wo)
    p = jnp.transpose(p, (2, 0, 1, 3, 4))          # (fin, 16, B, Ho, Wo)
    Xt = p.reshape(K, M).astype(jnp.bfloat16)      # K index = ci*16 + r*4 + c
    if M_pad != M:                                 # zero lanes add 0 to sum/sumsq
        Xt = jnp.pad(Xt, ((0, 0), (0, M_pad - M)))
    Wt = jnp.pad(w.reshape(fout, K),
                 ((0, fout_p - fout), (0, 0))).astype(jnp.bfloat16)   # (fout_p, K)

    cparams = pltpu.CompilerParams(
        dimension_semantics=("parallel",),
        vmem_limit_bytes=48 * 1024 * 1024)

    # ---- kernel 1: transposed conv matmul + per-tile channel sum / sumsq ----
    # TODO(synk): add a K-reduction grid axis with an f32 VMEM accumulator once
    # fin grows enough that the resident (fout_p, K) weights + (K, tm) activation
    # tile no longer fit comfortably in VMEM (notably on v7x's 64 MiB).
    conv_t, part_stats = pl.pallas_call(
        _conv_mm_kernel,
        out_shape=(jax.ShapeDtypeStruct((fout_p, M_pad), jnp.float32),
                   jax.ShapeDtypeStruct((n_tiles, fout_p, 2), jnp.float32)),
        grid=(n_tiles,),
        in_specs=[pl.BlockSpec((fout_p, K), lambda i: (0, 0)),   # resident weights
                  pl.BlockSpec((K, tm), lambda i: (0, i))],
        out_specs=(pl.BlockSpec((fout_p, tm), lambda i: (0, i)),
                   pl.BlockSpec((1, fout_p, 2), lambda i: (i, 0, 0))),
        compiler_params=cparams,
    )(Wt, Xt)

    # ---- tiny cross-tile reduction + per-channel BN scale/shift (f32) ----
    stats = part_stats.sum(axis=0)                 # (fout_p, 2)
    count = float(M)                               # padded lanes excluded (zeros)
    mean = stats[:, 0] / count
    # E[x^2] - E[x]^2 in f32, clamped at 0 to guard tiny negative round-off.
    var = jnp.maximum(stats[:, 1] / count - mean * mean, 0.0)
    gamma_p = jnp.pad(gamma.astype(jnp.float32), (0, fout_p - fout))
    beta_p = jnp.pad(beta.astype(jnp.float32), (0, fout_p - fout))
    scale = (gamma_p * lax.rsqrt(var + eps)).reshape(fout_p, 1)
    shift = (beta_p - mean * gamma_p * lax.rsqrt(var + eps)).reshape(fout_p, 1)

    # ---- kernel 2: fused BN affine + LeakyReLU (lane-dense (fout, M) layout) ----
    out_t = pl.pallas_call(
        functools.partial(_bn_act_kernel, slope=slope),
        out_shape=jax.ShapeDtypeStruct((fout_p, M_pad), jnp.float32),
        grid=(n_tiles,),
        in_specs=[pl.BlockSpec((fout_p, tm), lambda i: (0, i)),
                  pl.BlockSpec((fout_p, 1), lambda i: (0, 0)),
                  pl.BlockSpec((fout_p, 1), lambda i: (0, 0))],
        out_specs=pl.BlockSpec((fout_p, tm), lambda i: (0, i)),
        compiler_params=cparams,
    )(conv_t, scale, shift)

    # (fout, M) -> (B, fout, Ho, Wo): leading-dim permutation only.
    out = out_t[:fout, :M].reshape(fout, B, Ho, Wo)
    return jnp.transpose(out, (1, 0, 2, 3))


def conv_block_reference(x, w, gamma, beta, eps=1e-5, slope=0.2):
    conv = lax.conv_general_dilated(
        x.astype(jnp.float32), w.astype(jnp.float32),
        window_strides=(2, 2), padding=((1, 1), (1, 1)),
        dimension_numbers=("NCHW", "OIHW", "NCHW"))
    mean = conv.mean(axis=(0, 2, 3), keepdims=True)
    var = ((conv - mean) ** 2).mean(axis=(0, 2, 3), keepdims=True)
    y = (conv - mean) / jnp.sqrt(var + eps)
    y = y * gamma.reshape(1, -1, 1, 1) + beta.reshape(1, -1, 1, 1)
    return jnp.where(y >= 0, y, slope * y)


if __name__ == "__main__":
    # ConvBlock(fin=4, fout=8); input NCHW (2, 4, 16, 16) -> output (2, 8, 8, 8)
    B, fin, fout, H, W = 2, 4, 8, 16, 16
    key = jax.random.PRNGKey(0)
    kx, kw_, kg, kb = jax.random.split(key, 4)

    x = jax.random.normal(kx, (B, fin, H, W), dtype=jnp.float32)
    w = 0.1 * jax.random.normal(kw_, (fout, fin, 4, 4), dtype=jnp.float32)
    gamma = 1.0 + 0.1 * jax.random.normal(kg, (fout,), dtype=jnp.float32)
    beta = 0.1 * jax.random.normal(kb, (fout,), dtype=jnp.float32)

    out = conv_block_forward(x, w, gamma, beta)
    out = jax.block_until_ready(out)

    ref = conv_block_reference(x, w, gamma, beta)
    assert out.shape == (B, fout, H // 2, W // 2), out.shape
    # bf16 activations/weights on the MXU -> slightly looser tolerance vs f32 ref.
    assert jnp.allclose(out, ref, atol=2e-2, rtol=2e-2), (
        float(jnp.max(jnp.abs(out - ref))))

    print("KERNEL_OK")
</pallas_src>

<mosaic_0001>
module attributes {stable_mosaic.version = 11 : i64} {
  func.func @_conv_mm_kernel(%arg0: i32, %arg1: memref<8x64xbf16, #tpu.memory_space<vmem>>, %arg2: memref<64x128xbf16, #tpu.memory_space<vmem>>, %arg3: memref<8x128xf32, #tpu.memory_space<vmem>>, %arg4: memref<1x8x2xf32, #tpu.memory_space<vmem>>) attributes {dimension_semantics = [#tpu.dimension_semantics<parallel>], iteration_bounds = array<i64: 1>, scalar_prefetch = 0 : i64, scratch_operands = 0 : i64, tpu.core_type = #tpu.core_type<tc>, window_params = [{pipeline_mode = #tpu.pipeline_mode<synchronous>, transform_indices = @transform_0, window_bounds = array<i64: 8, 64>}, {transform_indices = @transform_1, window_bounds = array<i64: 64, 128>}, {transform_indices = @transform_2, window_bounds = array<i64: 8, 128>}, {transform_indices = @transform_3, window_bounds = array<i64: 1, 8, 2>}]} {
    %c0 = arith.constant 0 : index
    %c0_0 = arith.constant 0 : index
    %0 = vector.load %arg1[%c0, %c0_0] : memref<8x64xbf16, #tpu.memory_space<vmem>>, vector<8x64xbf16>
    %c0_1 = arith.constant 0 : index
    %c0_2 = arith.constant 0 : index
    %1 = vector.load %arg2[%c0_1, %c0_2] : memref<64x128xbf16, #tpu.memory_space<vmem>>, vector<64x128xbf16>
    %cst = arith.constant dense<0.000000e+00> : vector<8x128xf32>
    %2 = tpu.matmul %0, %1, %cst {dimension_numbers = #tpu.dot_dimension_numbers<[1], [0], [0], [1], [0, 0, 1, 1], [], []>} : vector<8x64xbf16>, vector<64x128xbf16>, vector<8x128xf32> -> vector<8x128xf32>
    %c0_3 = arith.constant 0 : index
    %c0_4 = arith.constant 0 : index
    %3 = vector.load %arg3[%c0_3, %c0_4] : memref<8x128xf32, #tpu.memory_space<vmem>>, vector<8x128xf32>
    tpu.vector_store %arg3[%c0_3, %c0_4], %2 {strides = array<i32>} : memref<8x128xf32, #tpu.memory_space<vmem>>, vector<8x128xf32>,
    %cst_5 = arith.constant dense<0.000000e+00> : vector<8xf32>
    %4 = vector.multi_reduction <add>, %2, %cst_5 [1] : vector<8x128xf32> to vector<8xf32>
    %5 = vector.shape_cast %4 : vector<8xf32> to vector<8x1xf32>
    %6 = arith.mulf %2, %2 : vector<8x128xf32>
    %cst_6 = arith.constant dense<0.000000e+00> : vector<8xf32>
    %7 = vector.multi_reduction <add>, %6, %cst_6 [1] : vector<8x128xf32> to vector<8xf32>
    %8 = vector.shape_cast %7 : vector<8xf32> to vector<8x1xf32>
    %9 = tpu.concatenate %5, %8 in 1 : vector<8x1xf32>, vector<8x1xf32> -> vector<8x2xf32>
    %10 = vector.shape_cast %9 : vector<8x2xf32> to vector<1x8x2xf32>
    %c0_7 = arith.constant 0 : index
    %c0_8 = arith.constant 0 : index
    %c0_9 = arith.constant 0 : index
    %11 = vector.load %arg4[%c0_7, %c0_8, %c0_9] : memref<1x8x2xf32, #tpu.memory_space<vmem>>, vector<1x8x2xf32>
    tpu.vector_store %arg4[%c0_7, %c0_8, %c0_9], %10 {strides = array<i32>} : memref<1x8x2xf32, #tpu.memory_space<vmem>>, vector<1x8x2xf32>,
    return
  }
  func.func @transform_0(%arg0: i32) -> (i32, i32) {
    %c0_i32 = arith.constant 0 : i32
    %c0_i32_0 = arith.constant 0 : i32
    %c0_i32_1 = arith.constant 0 : i32
    return %c0_i32, %c0_i32_0 : i32, i32
  }
  func.func @transform_1(%arg0: i32) -> (i32, i32) {
    %c0_i32 = arith.constant 0 : i32
    %c0_i32_0 = arith.constant 0 : i32
    return %c0_i32, %arg0 : i32, i32
  }
  func.func @transform_2(%arg0: i32) -> (i32, i32) {
    %c0_i32 = arith.constant 0 : i32
    %c0_i32_0 = arith.constant 0 : i32
    return %c0_i32, %arg0 : i32, i32
  }
  func.func @transform_3(%arg0: i32) -> (i32, i32, i32) {
    %c0_i32 = arith.constant 0 : i32
    %c0_i32_0 = arith.constant 0 : i32
    %c0_i32_1 = arith.constant 0 : i32
    return %arg0, %c0_i32, %c0_i32_0 : i32, i32, i32
  }
}

</mosaic_0001>

<bundles_post_ra>
// kernel: tpu_custom_call.1
= control target key start
LH: loop header
LB: loop body
LE: loop exit
PB: predicated region body
PF: predicated region fallthrough
CT: control target
= control target key end

     0   :  { %9 = vsyncpa [#allocation3], 0  ;;  %s286_s0 = inlined_call_operand.hbm [shape: bf16[8,64], index: 0, kind: input, shape index: {}]   ;;  %s287_s1 = inlined_call_operand.hbm [shape: bf16[64,128], index: 1, kind: input, shape index: {}]   ;;  %s288_s2 = inlined_call_operand.hbm [shape: f32[8,128], index: 2, kind: output, shape index: {0}]   ;;  %s289_s3 = inlined_call_operand.vmem [shape: f32[1,8,2], index: 3, kind: output, shape index: {1}]  }
   0x1   :  { %10 = vsyncpa [#allocation6], 0 }
   0x2   :  { %11 = vsyncpa [#allocation4], 0  ;;  %s247_s12 = smov [#allocation2]   ;;  %s248_s14 = smov [#allocation5]  }
   0x3   :  { %s18_s13 = sshll.u32 %s247_s12, 4  ;;  %s27_s15 = sshll.u32 %s248_s14, 4  ;;  %s19_s13 = int_to_ptr.vmem [resolvable:$true] %s18_s13  ;;  %s28_s15 = int_to_ptr.vmem [resolvable:$true] %s27_s15 }
   0x4   :  { %s189_s16 = scalar_lea.vmem %s19_s13, 64  ;;  %p194_p1 = scmp.lt.s32.totalorder %s19_s13, %s19_s13 }
   0x5   :  { %p190_p0 = scmp.ne.s32.totalorder %s19_s13, %s189_s16  ;;  %p195_p2 = scmp.lt.s32.totalorder %s189_s16, %s189_s16 }
   0x7   :  { %p196_p3 = por %p195_p2, %p194_p1 }
   0x9   :  { %p197_p4 = pnand %p196_p3, %p190_p0 }
   0xb   :  { %200 = shalt.err (!%p197_p4)
}
   0xc   :  { %21 = dma.hbm_to_vmem [thread:$0]  %s286_s0, 64, %s19_s13, [#allocation3]  }
   0xd   :  { %s209_s19 = scalar_lea.vmem %s28_s15, 512  ;;  %p214_p6 = scmp.lt.s32.totalorder %s28_s15, %s28_s15 }
   0xe   :  { %p210_p5 = scmp.ne.s32.totalorder %s28_s15, %s209_s19  ;;  %p215_p7 = scmp.lt.s32.totalorder %s209_s19, %s209_s19 }
  0x10   :  { %p216_p8 = por %p215_p7, %p214_p6 }
  0x12   :  { %p217_p9 = pnand %p216_p8, %p210_p5 }
  0x14   :  { %220 = shalt.err (!%p217_p9)
}
  0x15   :  { %s249_s20 = smov 64   ;;  %s250_s21 = smov 4  }
  0x16   :  { %33 = dma.hbm_to_vmem [thread:$0]  %s287_s1, 512, %s28_s15, [#allocation6], %s249_s20, %s249_s20, %s250_s21  }
  0x17   :  { %241 = dma.done.wait [#allocation3], 64  }
  0x18   :  { %242 = vsyncadd [#allocation3], 4294967232 }
  0x19   :  { %243 = dma.done.wait [#allocation6], 512  }
  0x1a   :  { %244 = vsyncadd [#allocation6], 4294966784  ;;  %v251_v0 = vmov 0.0   ;;  %vm252_vm0 = vmmov 0   ;;  %v177_v1 = vld [vmem:[#allocation5 + $0x18] sm:$0xff]   ;;  %v178_v2 = vld [vmem:[#allocation5 + $0x10] sm:$0xff]  }
  0x1b   :  { %158 = vmatprep.subr.bf16.mxu0 %v251_v0  ;;  %166 = vmatprep.mubr.msk.bf16.mxu0 %vm252_vm0, %v251_v0  ;;  %v179_v3 = vld [vmem:[#allocation5 + $0x8] sm:$0xff]   ;;  %v180_v4 = vld [vmem:[#allocation5] sm:$0xff]   ;;  %v41_v5 = vld [vmem:[#allocation2] sm:$0xf]  ;;  %vm74_vm1 = vcmask 523264   ;;  %s253_s0 = smov [#allocation7]  }
  0x1c   :  { %159 = vmatpush3.bf16.msra.mxu0 %v177_v1  ;;  %s134_s1 = sshll.u32 %s253_s0, 4  ;;  %s135_s1 = int_to_ptr.vmem [resolvable:$true] %s134_s1 }
  0x1d   :  { %160 = vmatprep.subr.bf16.mxu0 %v251_v0  ;;  %s221_s24 = scalar_lea.vmem %s135_s1, 128  ;;  %p226_p11 = scmp.lt.s32.totalorder %s135_s1, %s135_s1 }
  0x1e   :  { %p222_p10 = scmp.ne.s32.totalorder %s135_s1, %s221_s24  ;;  %p227_p12 = scmp.lt.s32.totalorder %s221_s24, %s221_s24 }
  0x20   :  { %161 = vmatpush3.bf16.msra.mxu0 %v178_v2  ;;  %p228_p13 = por %p227_p12, %p226_p11 }
  0x21   :  { %162 = vmatprep.subr.bf16.mxu0 %v251_v0 }
  0x22   :  { %p229_p0 = pnand %p228_p13, %p222_p10 }
  0x24   :  { %163 = vmatpush3.bf16.msra.mxu0 %v179_v3 }
  0x25   :  { %164 = vmatprep.subr.bf16.mxu0 %v251_v0 }
  0x28   :  { %165 = vmatpush3.bf16.msra.mxu0 %v180_v4 }
  0x2b   :  { %167 = vmatmul.mubr.msk.bf16.vlgmr.msra.gmra.mxu0 %vm74_vm1, %v41_v5 }
  0xeb   :  { %v112_v6 = vpop.f32.mrf.mxu0 }
  0xec   :  { %118 = vst [vmem:[#allocation7] sm:$0xff] %v112_v6  ;;  %119 = vadd.xlane.f32.xlu0 %v112_v6  ;;  %v121_v8 = vmul.f32 %v112_v6, %v112_v6 }
  0xed   :  { %v168_v7 = vpop.f32.mrf.mxu0 }
  0xef   :  { %v115_v9 = vpop.f32.mrf.mxu0 }
  0xf0   :  { %122 = vadd.xlane.f32.xlu0 %v121_v8 }
  0xf1   :  { %v169_v10 = vpop.f32.mrf.mxu0 }
  0xf2   :  { %232 = shalt.err (!%p229_p0)
}
  0xf3   :  { %137 = dma.vmem_to_hbm [thread:$0]  %s135_s1, 128, %s288_s2, [#allocation4]   ;;  %vm124_vm2 = vcmask 7168   ;;  %vm126_vm3 = vcmask 15360  }
 0x175   :  { %v120_v11 = vpop.xlane.xlu0 %119 }
 0x179   :  { %v123_v12 = vpop.xlane.xlu0 %122 }
 0x17a   :  { %v125_v13 = vsel %vm124_vm2, %v120_v11, %v123_v12 }
 0x17b   :  { %127 = vst.msk [vmem:[%s289_s3] sm:$0xff] %vm126_vm3, %v125_v13 }
 0x17c   :  { %245 = dma.done.wait [#allocation4], 128  }
 0x17d   :  { %246 = vsyncadd [#allocation4], 4294967168 }
 0x17e   :  { %145 = vsyncpa [#allocation3], 1 }
 0x17f   :  { %146 = vsyncpa [#allocation6], 1 }
 0x180   :  { %147 = vsyncpa [#allocation4], 1 }

</bundles_post_ra>
